<compile_context>
chip_gen: v7x
topology: tpu7x:2x2x1
jax: 0.10.0
libtpu: 0.0.40
codegen_flags: <defaults>
</compile_context>

<pallas_src>
import functools

import jax
import jax.numpy as jnp
from jax.experimental import pallas as pl
from jax.experimental.pallas import tpu as pltpu


def _round_up(x, m):
    return ((x + m - 1) // m) * m


def _actor_kernel(state_ref, w1_ref, b1_ref, w2_ref, b2_ref, w3_ref, b3_ref,
                  out_ref, *, max_action):
    # Everything lives in VMEM as a single block (no grid).
    x = state_ref[...]                                                  # [Bp, Sp] bf16
    h1 = jnp.dot(x, w1_ref[...], preferred_element_type=jnp.float32) + b1_ref[...]
    h1 = jnp.maximum(h1, 0.0).astype(jnp.bfloat16)                      # ReLU, bf16 -> next MXU push
    h2 = jnp.dot(h1, w2_ref[...], preferred_element_type=jnp.float32) + b2_ref[...]
    h2 = jnp.maximum(h2, 0.0).astype(jnp.bfloat16)
    y = jnp.dot(h2, w3_ref[...], preferred_element_type=jnp.float32) + b3_ref[...]
    out_ref[...] = max_action * jnp.tanh(y)                             # f32, lane-dense store


def init_actor_params(key, state_size, action_size):
    """PyTorch-style Linear init (U(-1/sqrt(fan_in), +)), f32, unpadded."""
    ks = jax.random.split(key, 6)

    def linear(kw, kb, fan_in, fan_out):
        bound = 1.0 / jnp.sqrt(fan_in)
        w = jax.random.uniform(kw, (fan_in, fan_out), jnp.float32, -bound, bound)
        b = jax.random.uniform(kb, (1, fan_out), jnp.float32, -bound, bound)
        return w, b

    w1, b1 = linear(ks[0], ks[1], state_size, 300)
    w2, b2 = linear(ks[2], ks[3], 300, 400)
    w3, b3 = linear(ks[4], ks[5], 400, action_size)
    return {"w1": w1, "b1": b1, "w2": w2, "b2": b2, "w3": w3, "b3": b3}


def prepare_actor_params(params):
    """Zero-pad feature dims to MXU/lane-friendly sizes and cast weights to bf16.

    Zero padding keeps the forward pass mathematically identical (padded
    columns/rows contribute exactly 0).  Do this once; reuse across calls.
    """
    w1, b1 = params["w1"], params["b1"]
    w2, b2 = params["w2"], params["b2"]
    w3, b3 = params["w3"], params["b3"]
    s, h1 = w1.shape
    _, h2 = w2.shape
    _, a = w3.shape
    sp = _round_up(s, 32)      # 24  -> 32  (bf16 sublane-packing friendly K dim)
    h1p = _round_up(h1, 128)   # 300 -> 384
    h2p = _round_up(h2, 128)   # 400 -> 512
    ap = _round_up(a, 128)     # 4   -> 128 (lane-dense output, no masked vst)

    def pad2(x, r, c):
        return jnp.pad(x, ((0, r - x.shape[0]), (0, c - x.shape[1])))

    prepared = {
        "w1": pad2(w1, sp, h1p).astype(jnp.bfloat16),
        "b1": pad2(b1, 1, h1p).astype(jnp.float32),
        "w2": pad2(w2, h1p, h2p).astype(jnp.bfloat16),
        "b2": pad2(b2, 1, h2p).astype(jnp.float32),
        "w3": pad2(w3, h2p, ap).astype(jnp.bfloat16),
        "b3": pad2(b3, 1, ap).astype(jnp.float32),
    }
    meta = {"state_size": s, "state_pad": sp, "h1": h1p, "h2": h2p,
            "action_size": a, "action_pad": ap}
    return prepared, meta


def actor_forward(state, prepared, meta, max_action):
    """state: [B, state_size] f32; prepared/meta from prepare_actor_params."""
    B, S = state.shape
    Bp = _round_up(max(B, 1), 8)                    # f32 sublane multiple
    Sp, H1, H2, Ap = meta["state_pad"], meta["h1"], meta["h2"], meta["action_pad"]

    state_p = jnp.pad(state, ((0, Bp - B), (0, Sp - S))).astype(jnp.bfloat16)

    vmem = pl.BlockSpec(memory_space=pltpu.MemorySpace.VMEM)

    def _nbytes(shape, itemsize):
        n = 1
        for d in shape:
            n *= d
        return n * itemsize

    flops = 2 * Bp * (Sp * H1 + H1 * H2 + H2 * Ap)
    bytes_accessed = (
        _nbytes((Bp, Sp), 2)
        + _nbytes((Sp, H1), 2) + _nbytes((1, H1), 4)
        + _nbytes((H1, H2), 2) + _nbytes((1, H2), 4)
        + _nbytes((H2, Ap), 2) + _nbytes((1, Ap), 4)
        + _nbytes((Bp, Ap), 4)
    )

    out = pl.pallas_call(
        functools.partial(_actor_kernel, max_action=float(max_action)),
        out_shape=jax.ShapeDtypeStruct((Bp, Ap), jnp.float32),
        in_specs=[vmem] * 7,
        out_specs=vmem,
        cost_estimate=pl.CostEstimate(
            flops=flops,
            transcendentals=Bp * Ap,
            bytes_accessed=bytes_accessed,
        ),
    )(state_p, prepared["w1"], prepared["b1"], prepared["w2"], prepared["b2"],
      prepared["w3"], prepared["b3"])

    return out[:B, :meta["action_size"]]


if __name__ == "__main__":
    # BipedalWalker-like small shapes: state_size=24, action_size=4, batch=2.
    state_size, action_size, max_action = 24, 4, 1.0
    batch = 2

    key = jax.random.PRNGKey(0)
    k_params, k_state = jax.random.split(key)
    params = init_actor_params(k_params, state_size, action_size)
    state = jax.random.normal(k_state, (batch, state_size), jnp.float32)

    prepared, meta = prepare_actor_params(params)   # one-time pad + bf16 cast
    out = actor_forward(state, prepared, meta, max_action)
    out = jax.block_until_ready(out)
    assert out.shape == (batch, action_size)

    # Reference 1: plain-JAX replay of the exact bf16/f32-accum recipe (tight check).
    sb = state.astype(jnp.bfloat16)
    r1 = jnp.maximum(jnp.dot(sb, params["w1"].astype(jnp.bfloat16),
                             preferred_element_type=jnp.float32) + params["b1"], 0.0)
    r1 = r1.astype(jnp.bfloat16)
    r2 = jnp.maximum(jnp.dot(r1, params["w2"].astype(jnp.bfloat16),
                             preferred_element_type=jnp.float32) + params["b2"], 0.0)
    r2 = r2.astype(jnp.bfloat16)
    ref_bf16 = max_action * jnp.tanh(
        jnp.dot(r2, params["w3"].astype(jnp.bfloat16),
                preferred_element_type=jnp.float32) + params["b3"])
    assert jnp.allclose(out, ref_bf16, atol=5e-3, rtol=5e-3), "mismatch vs bf16 reference"

    # Reference 2: full-f32 PyTorch-equivalent math (loose check: bf16 weight quantization).
    h1 = jnp.maximum(state @ params["w1"] + params["b1"], 0.0)
    h2 = jnp.maximum(h1 @ params["w2"] + params["b2"], 0.0)
    ref_f32 = max_action * jnp.tanh(h2 @ params["w3"] + params["b3"])
    assert jnp.allclose(out, ref_f32, atol=5e-2, rtol=5e-2), "mismatch vs f32 reference"

    print("KERNEL_OK")
</pallas_src>

<mosaic_0001>
module attributes {stable_mosaic.version = 11 : i64} {
  func.func @_actor_kernel(%arg0: memref<8x32xbf16, #tpu.memory_space<vmem>>, %arg1: memref<32x384xbf16, #tpu.memory_space<vmem>>, %arg2: memref<1x384xf32, #tpu.memory_space<vmem>>, %arg3: memref<384x512xbf16, #tpu.memory_space<vmem>>, %arg4: memref<1x512xf32, #tpu.memory_space<vmem>>, %arg5: memref<512x128xbf16, #tpu.memory_space<vmem>>, %arg6: memref<1x128xf32, #tpu.memory_space<vmem>>, %arg7: memref<8x128xf32, #tpu.memory_space<vmem>>) attributes {dimension_semantics = [], scalar_prefetch = 0 : i64, scratch_operands = 0 : i64, tpu.core_type = #tpu.core_type<tc>} {
    %c0 = arith.constant 0 : index
    %c0_0 = arith.constant 0 : index
    %0 = vector.load %arg0[%c0, %c0_0] : memref<8x32xbf16, #tpu.memory_space<vmem>>, vector<8x32xbf16>
    %c0_1 = arith.constant 0 : index
    %c0_2 = arith.constant 0 : index
    %1 = vector.load %arg1[%c0_1, %c0_2] : memref<32x384xbf16, #tpu.memory_space<vmem>>, vector<32x384xbf16>
    %cst = arith.constant dense<0.000000e+00> : vector<8x384xf32>
    %2 = tpu.matmul %0, %1, %cst {dimension_numbers = #tpu.dot_dimension_numbers<[1], [0], [0], [1], [0, 0, 1, 1], [], []>} : vector<8x32xbf16>, vector<32x384xbf16>, vector<8x384xf32> -> vector<8x384xf32>
    %c0_3 = arith.constant 0 : index
    %c0_4 = arith.constant 0 : index
    %3 = vector.load %arg2[%c0_3, %c0_4] : memref<1x384xf32, #tpu.memory_space<vmem>>, vector<1x384xf32>
    %4 = vector.broadcast %3 : vector<1x384xf32> to vector<8x384xf32>
    %5 = arith.addf %2, %4 : vector<8x384xf32>
    %cst_5 = arith.constant 0.000000e+00 : f32
    %6 = vector.broadcast %cst_5 : f32 to vector<8x384xf32>
    %7 = arith.maximumf %5, %6 : vector<8x384xf32>
    %8 = arith.truncf %7 : vector<8x384xf32> to vector<8x384xbf16>
    %c0_6 = arith.constant 0 : index
    %c0_7 = arith.constant 0 : index
    %9 = vector.load %arg3[%c0_6, %c0_7] : memref<384x512xbf16, #tpu.memory_space<vmem>>, vector<384x512xbf16>
    %cst_8 = arith.constant dense<0.000000e+00> : vector<8x512xf32>
    %10 = tpu.matmul %8, %9, %cst_8 {dimension_numbers = #tpu.dot_dimension_numbers<[1], [0], [0], [1], [0, 0, 1, 1], [], []>} : vector<8x384xbf16>, vector<384x512xbf16>, vector<8x512xf32> -> vector<8x512xf32>
    %c0_9 = arith.constant 0 : index
    %c0_10 = arith.constant 0 : index
    %11 = vector.load %arg4[%c0_9, %c0_10] : memref<1x512xf32, #tpu.memory_space<vmem>>, vector<1x512xf32>
    %12 = vector.broadcast %11 : vector<1x512xf32> to vector<8x512xf32>
    %13 = arith.addf %10, %12 : vector<8x512xf32>
    %cst_11 = arith.constant 0.000000e+00 : f32
    %14 = vector.broadcast %cst_11 : f32 to vector<8x512xf32>
    %15 = arith.maximumf %13, %14 : vector<8x512xf32>
    %16 = arith.truncf %15 : vector<8x512xf32> to vector<8x512xbf16>
    %c0_12 = arith.constant 0 : index
    %c0_13 = arith.constant 0 : index
    %17 = vector.load %arg5[%c0_12, %c0_13] : memref<512x128xbf16, #tpu.memory_space<vmem>>, vector<512x128xbf16>
    %cst_14 = arith.constant dense<0.000000e+00> : vector<8x128xf32>
    %18 = tpu.matmul %16, %17, %cst_14 {dimension_numbers = #tpu.dot_dimension_numbers<[1], [0], [0], [1], [0, 0, 1, 1], [], []>} : vector<8x512xbf16>, vector<512x128xbf16>, vector<8x128xf32> -> vector<8x128xf32>
    %c0_15 = arith.constant 0 : index
    %c0_16 = arith.constant 0 : index
    %19 = vector.load %arg6[%c0_15, %c0_16] : memref<1x128xf32, #tpu.memory_space<vmem>>, vector<1x128xf32>
    %20 = vector.broadcast %19 : vector<1x128xf32> to vector<8x128xf32>
    %21 = arith.addf %18, %20 : vector<8x128xf32>
    %22 = math.tanh %21 : vector<8x128xf32>
    %cst_17 = arith.constant 1.000000e+00 : f32
    %23 = vector.broadcast %cst_17 : f32 to vector<8x128xf32>
    %24 = arith.mulf %23, %22 : vector<8x128xf32>
    %c0_18 = arith.constant 0 : index
    %c0_19 = arith.constant 0 : index
    %25 = vector.load %arg7[%c0_18, %c0_19] : memref<8x128xf32, #tpu.memory_space<vmem>>, vector<8x128xf32>
    tpu.vector_store %arg7[%c0_18, %c0_19], %24 {strides = array<i32>} : memref<8x128xf32, #tpu.memory_space<vmem>>, vector<8x128xf32>,
    return
  }
}

</mosaic_0001>

<bundles_post_ra>
// kernel: tpu_custom_call.1
= control target key start
LH: loop header
LB: loop body
LE: loop exit
PB: predicated region body
PF: predicated region fallthrough
CT: control target
= control target key end

     0   :  { %12 = vsyncpa [#allocation3], 0  ;;  %s2028_s0 = inlined_call_operand.hbm [shape: bf16[8,32], index: 0, kind: input, shape index: {}]   ;;  %s2029_s1 = inlined_call_operand.hbm [shape: bf16[32,384], index: 1, kind: input, shape index: {}]   ;;  %s2030_s2 = inlined_call_operand.vmem [shape: f32[1,384], index: 2, kind: input, shape index: {}]   ;;  %s2031_s3 = inlined_call_operand.hbm [shape: bf16[384,512], index: 3, kind: input, shape index: {}]   ;;  %s2032_s4 = inlined_call_operand.vmem [shape: f32[1,512], index: 4, kind: input, shape index: {}]   ;;  %s2033_s5 = inlined_call_operand.hbm [shape: bf16[512,128], index: 5, kind: input, shape index: {}]   ;;  %s2034_s6 = inlined_call_operand.vmem [shape: f32[1,128], index: 6, kind: input, shape index: {}]   ;;  %s2035_s7 = inlined_call_operand.hbm [shape: f32[8,128], index: 7, kind: output, shape index: {}]  }
   0x1   :  { %13 = vsyncpa [#allocation6], 0 }
   0x2   :  { %14 = vsyncpa [#allocation9], 0 }
   0x3   :  { %15 = vsyncpa [#allocation4], 0  ;;  %s1884_s24 = smov [#allocation5]   ;;  %s1766_s28 = scalar_lea.hbm %s2029_s1, 768 }
   0x4   :  { %s31_s25 = sshll.u32 %s1884_s24, 4  ;;  %p1767_p0 = scmp.ne.s32.totalorder %s2029_s1, %s1766_s28  ;;  %s32_s25 = int_to_ptr.vmem [resolvable:$true] %s31_s25 }
   0x5   :  { %p1770_p1 = scmp.lt.u32.totalorder %s1766_s28, %s2029_s1 }
   0x7   :  { %p1772_p2 = pnand %p1770_p1, %p1767_p0 }
   0x9   :  { %1775 = shalt.err (!%p1772_p2)
}
   0xa   :  { %s1776_s10 = scalar_lea.vmem %s32_s25, 768  ;;  %p1781_p4 = scmp.lt.s32.totalorder %s32_s25, %s32_s25 }
   0xb   :  { %p1777_p3 = scmp.ne.s32.totalorder %s32_s25, %s1776_s10  ;;  %p1782_p5 = scmp.lt.s32.totalorder %s1776_s10, %s1776_s10 }
   0xd   :  { %p1783_p6 = por %p1782_p5, %p1781_p4 }
   0xf   :  { %p1784_p7 = pnand %p1783_p6, %p1777_p3 }
  0x11   :  { %1787 = shalt.err (!%p1784_p7)
}
  0x12   :  { %s1885_s11 = smov 192   ;;  %s1886_s12 = smov 12  }
  0x13   :  { %37 = dma.hbm_to_vmem [thread:$0]  %s2029_s1, 768, %s32_s25, [#allocation6], %s1885_s11, %s1885_s11, %s1886_s12  }
  0x14   :  { %s1887_s15 = smov [#allocation2]   ;;  %s1888_s17 = smov [#allocation7]  }
  0x15   :  { %s22_s16 = sshll.u32 %s1887_s15, 4  ;;  %s45_s18 = sshll.u32 %s1888_s17, 4  ;;  %s23_s16 = int_to_ptr.vmem [resolvable:$true] %s22_s16  ;;  %s46_s18 = int_to_ptr.vmem [resolvable:$true] %s45_s18 }
  0x16   :  { %s1788_s21 = scalar_lea.hbm %s2028_s0, 64 }
  0x17   :  { %p1789_p8 = scmp.ne.s32.totalorder %s2028_s0, %s1788_s21  ;;  %p1792_p9 = scmp.lt.u32.totalorder %s1788_s21, %s2028_s0 }
  0x19   :  { %p1794_p10 = pnand %p1792_p9, %p1789_p8 }
  0x1b   :  { %1797 = shalt.err (!%p1794_p10)
}
  0x1c   :  { %s1798_s1 = scalar_lea.vmem %s23_s16, 64  ;;  %p1803_p12 = scmp.lt.s32.totalorder %s23_s16, %s23_s16 }
  0x1d   :  { %p1799_p11 = scmp.ne.s32.totalorder %s23_s16, %s1798_s1  ;;  %p1804_p13 = scmp.lt.s32.totalorder %s1798_s1, %s1798_s1 }
  0x1f   :  { %p1805_p0 = por %p1804_p13, %p1803_p12 }
  0x21   :  { %p1806_p1 = pnand %p1805_p0, %p1799_p11 }
  0x23   :  { %1809 = shalt.err (!%p1806_p1)
}
  0x24   :  { %25 = dma.hbm_to_vmem [thread:$0]  %s2028_s0, 64, %s23_s16, [#allocation3]  }
  0x25   :  { %s1810_s30 = scalar_lea.hbm %s2031_s3, 12288 }
  0x26   :  { %p1811_p2 = scmp.ne.s32.totalorder %s2031_s3, %s1810_s30  ;;  %p1814_p3 = scmp.lt.u32.totalorder %s1810_s30, %s2031_s3 }
  0x28   :  { %p1816_p4 = pnand %p1814_p3, %p1811_p2 }
  0x2a   :  { %1819 = shalt.err (!%p1816_p4)
}
  0x2b   :  { %s1820_s12 = scalar_lea.vmem %s46_s18, 12288  ;;  %p1825_p6 = scmp.lt.s32.totalorder %s46_s18, %s46_s18 }
  0x2c   :  { %p1821_p5 = scmp.ne.s32.totalorder %s46_s18, %s1820_s12  ;;  %p1826_p7 = scmp.lt.s32.totalorder %s1820_s12, %s1820_s12 }
  0x2e   :  { %p1827_p8 = por %p1826_p7, %p1825_p6 }
  0x30   :  { %p1828_p9 = pnand %p1827_p8, %p1821_p5 }
  0x32   :  { %1831 = shalt.err (!%p1828_p9)
}
  0x33   :  { %s1889_s0 = smov 256   ;;  %s1890_s13 = smov 16  }
  0x34   :  { %51 = dma.hbm_to_vmem [thread:$0]  %s2031_s3, 12288, %s46_s18, [#allocation6], %s1889_s0, %s1889_s0, %s1890_s13  }
  0x35   :  { %s1891_s16 = smov [#allocation8]   ;;  %s1832_s21 = scalar_lea.hbm %s2033_s5, 4096 }
  0x36   :  { %s59_s17 = sshll.u32 %s1891_s16, 4  ;;  %p1833_p10 = scmp.ne.s32.totalorder %s2033_s5, %s1832_s21  ;;  %s60_s17 = int_to_ptr.vmem [resolvable:$true] %s59_s17 }
  0x37   :  { %p1836_p11 = scmp.lt.u32.totalorder %s1832_s21, %s2033_s5 }
  0x39   :  { %p1838_p12 = pnand %p1836_p11, %p1833_p10 }
  0x3b   :  { %1841 = shalt.err (!%p1838_p12)
}
  0x3c   :  { %s1842_s1 = scalar_lea.vmem %s60_s17, 4096  ;;  %p1847_p0 = scmp.lt.s32.totalorder %s60_s17, %s60_s17 }
  0x3d   :  { %p1843_p13 = scmp.ne.s32.totalorder %s60_s17, %s1842_s1  ;;  %p1848_p1 = scmp.lt.s32.totalorder %s1842_s1, %s1842_s1 }
  0x3f   :  { %p1849_p2 = por %p1848_p1, %p1847_p0 }
  0x41   :  { %p1850_p3 = pnand %p1849_p2, %p1843_p13 }
  0x43   :  { %1853 = shalt.err (!%p1850_p3)
}
  0x44   :  { %s1892_s3 = smov 64   ;;  %s1893_s18 = smov 4  }
  0x45   :  { %65 = dma.hbm_to_vmem [thread:$0]  %s2033_s5, 4096, %s60_s17, [#allocation9], %s1892_s3, %s1892_s3, %s1893_s18  }
  0x46   :  { %1876 = dma.done.wait [#allocation3], 64  }
  0x47   :  { %1877 = vsyncadd [#allocation3], 4294967232 }
  0x48   :  { %1878 = dma.done.wait [#allocation6], 13056  }
  0x49   :  { %1879 = vsyncadd [#allocation6], 4294954240 }
  0x4a   :  { %1880 = dma.done.wait [#allocation9], 4096  }
  0x4b   :  { %1881 = vsyncadd [#allocation9], 4294963200  ;;  %v1894_v0 = vmov 0   ;;  %v1895_v1 = vmov 0.0   ;;  %vm1896_vm0 = vmmov 0   ;;  %vm139_vm1 = vcmask 261120  }
  0x4c   :  { %175 = vmatprep.mubr.bf16.mxu0 %v1894_v0  ;;  %1546 = vmatprep.subr.bf16.mxu1 %v1895_v1  ;;  %v1580_v2 = vld [vmem:[#allocation5 + $0x4] ss:$12 sps:$4 sm:$0xff]   ;;  %v1582_v3 = vld [vmem:[#allocation5] ss:$12 sps:$4 sm:$0xff]   ;;  %v1583_v4 = vld [vmem:[#allocation5 + $0x1c] ss:$12 sps:$4 sm:$0xff]  }
  0x4d   :  { %1550 = vmatprep.mubr.msk.bf16.mxu1 %vm1896_vm0, %v1895_v1  ;;  %143 = vmatprep.subr.bf16.mxu0 %v1580_v2  ;;  %v1585_v5 = vld [vmem:[#allocation5 + $0x18] ss:$12 sps:$4 sm:$0xff]   ;;  %v1586_v6 = vld [vmem:[#allocation5 + $0x8] ss:$12 sps:$4 sm:$0xff]   ;;  %v81_v7 = vld [vmem:[#allocation2] sm:$0xf] }
  0x4e   :  { %144 = vmatpush1.bf16.msra.mxu0 %v1582_v3  ;;  %1547 = vmatpush3.bf16.msra.mxu1 %v1586_v6  ;;  %v1587_v8 = vld [vmem:[#allocation5 + $0x20] ss:$12 sps:$4 sm:$0xff]   ;;  %v1590_v9 = vld [vmem:[#allocation7 + $0x4] ss:$16 sps:$4 sm:$0xff]   ;;  %v1591_v13 = vld [vmem:[#allocation7 + $0x8] ss:$16 sps:$4 sm:$0xff]  }
  0x4f   :  { %145 = vmatprep.subr.bf16.mxu0 %v1583_v4  ;;  %1548 = vmatprep.subr.bf16.mxu1 %v1895_v1  ;;  %v1588_v10 = vld [vmem:[#allocation7] ss:$16 sps:$4 sm:$0xff]   ;;  %v1593_v11 = vld [vmem:[#allocation7 + $0xc] ss:$16 sps:$4 sm:$0xff]   ;;  %v1596_v12 = vld [vmem:[#allocation7 + $0x24] ss:$16 sps:$4 sm:$0xff]  }
  0x50   :  { %v1599_v14 = vld [vmem:[#allocation7 + $0x2c] ss:$16 sps:$4 sm:$0xff]   ;;  %v1594_v15 = vld [vmem:[#allocation7 + $0x20] ss:$16 sps:$4 sm:$0xff]   ;;  %v1602_v16 = vld [vmem:[#allocation7 + $0x44] ss:$16 sps:$4 sm:$0xff]  }
  0x51   :  { %v1597_v17 = vld [vmem:[#allocation7 + $0x28] ss:$16 sps:$4 sm:$0xff]   ;;  %v1605_v18 = vld [vmem:[#allocation7 + $0x4c] ss:$16 sps:$4 sm:$0xff]   ;;  %v1600_v19 = vld [vmem:[#allocation7 + $0x40] ss:$16 sps:$4 sm:$0xff]  }
  0x52   :  { %146 = vmatpush1.bf16.msra.mxu0 %v1585_v5  ;;  %1549 = vmatpush3.bf16.msra.mxu1 %v1587_v8  ;;  %v1608_v20 = vld [vmem:[#allocation7 + $0x64] ss:$16 sps:$4 sm:$0xff]   ;;  %v1603_v21 = vld [vmem:[#allocation7 + $0x48] ss:$16 sps:$4 sm:$0xff]   ;;  %v1611_v22 = vld [vmem:[#allocation7 + $0x6c] ss:$16 sps:$4 sm:$0xff]  }
  0x53   :  { %828 = vmatprep.subr.bf16.mxu0 %v1590_v9  ;;  %910 = vmatprep.subr.bf16.mxu1 %v1593_v11  ;;  %v1606_v23 = vld [vmem:[#allocation7 + $0x60] ss:$16 sps:$4 sm:$0xff]   ;;  %v1614_v24 = vld [vmem:[#allocation7 + $0x84] ss:$16 sps:$4 sm:$0xff]   ;;  %v1609_v25 = vld [vmem:[#allocation7 + $0x68] ss:$16 sps:$4 sm:$0xff]  }
  0x54   :  { %v1617_v26 = vld [vmem:[#allocation7 + $0x8c] ss:$16 sps:$4 sm:$0xff]   ;;  %v1612_v27 = vld [vmem:[#allocation7 + $0x80] ss:$16 sps:$4 sm:$0xff]   ;;  %v1620_v28 = vld [vmem:[#allocation7 + $0xa4] ss:$16 sps:$4 sm:$0xff]  }
  0x55   :  { %1368 = vmatmul.mubr.msk.bf16.vlgmr.msra.gmra.mrb[0].mxu0 %vm139_vm1, %v81_v7  ;;  %1551 = vmatmul.mubr.msk.bf16.vlgmr.msra.gmra.mrb[0].mxu1 %vm139_vm1, %v81_v7  ;;  %v1615_v29 = vld [vmem:[#allocation7 + $0x88] ss:$16 sps:$4 sm:$0xff]   ;;  %v1623_v30 = vld [vmem:[#allocation7 + $0xac] ss:$16 sps:$4 sm:$0xff]   ;;  %v1618_v31 = vld [vmem:[#allocation7 + $0xa0] ss:$16 sps:$4 sm:$0xff]  }
  0x56   :  { %829 = vmatpush1.bf16.msra.mxu0 %v1588_v10  ;;  %911 = vmatpush1.bf16.msra.mxu1 %v1591_v13  ;;  %v1626_v32 = vld [vmem:[#allocation7 + $0xc4] ss:$16 sps:$4 sm:$0xff]   ;;  %v1621_v33 = vld [vmem:[#allocation7 + $0xa8] ss:$16 sps:$4 sm:$0xff]   ;;  %v1629_v34 = vld [vmem:[#allocation7 + $0xcc] ss:$16 sps:$4 sm:$0xff]  }
  0x57   :  { %830 = vmatprep.subr.bf16.mxu0 %v1596_v12  ;;  %912 = vmatprep.subr.bf16.mxu1 %v1599_v14  ;;  %v1624_v35 = vld [vmem:[#allocation7 + $0xc0] ss:$16 sps:$4 sm:$0xff]   ;;  %v1632_v36 = vld [vmem:[#allocation7 + $0xe4] ss:$16 sps:$4 sm:$0xff]   ;;  %v1627_v37 = vld [vmem:[#allocation7 + $0xc8] ss:$16 sps:$4 sm:$0xff]   ;;  %v92_v12 = vlaneseq }
  0x58   :  { %v1635_v38 = vld [vmem:[#allocation7 + $0xec] ss:$16 sps:$4 sm:$0xff]   ;;  %v1630_v39 = vld [vmem:[#allocation7 + $0xe0] ss:$16 sps:$4 sm:$0xff]   ;;  %v1638_v40 = vld [vmem:[#allocation7 + $0x104] ss:$16 sps:$4 sm:$0xff]  }
  0x59   :  { %v1633_v41 = vld [vmem:[#allocation7 + $0xe8] ss:$16 sps:$4 sm:$0xff]   ;;  %v1641_v42 = vld [vmem:[#allocation7 + $0x10c] ss:$16 sps:$4 sm:$0xff]   ;;  %v1636_v43 = vld [vmem:[#allocation7 + $0x100] ss:$16 sps:$4 sm:$0xff]  }
  0x5a   :  { %831 = vmatpush1.bf16.msra.mxu0 %v1594_v15  ;;  %913 = vmatpush1.bf16.msra.mxu1 %v1597_v17  ;;  %v1639_v44 = vld [vmem:[#allocation7 + $0x108] ss:$16 sps:$4 sm:$0xff]   ;;  %v1644_v45 = vld [vmem:[#allocation7 + $0x124] ss:$16 sps:$4 sm:$0xff]   ;;  %v1642_v46 = vld [vmem:[#allocation7 + $0x120] ss:$16 sps:$4 sm:$0xff]  }
  0x5b   :  { %832 = vmatprep.subr.bf16.mxu0 %v1602_v16  ;;  %914 = vmatprep.subr.bf16.mxu1 %v1605_v18  ;;  %v1647_v47 = vld [vmem:[#allocation7 + $0x12c] ss:$16 sps:$4 sm:$0xff]   ;;  %v1650_v48 = vld [vmem:[#allocation7 + $0x144] ss:$16 sps:$4 sm:$0xff]   ;;  %v1645_v49 = vld [vmem:[#allocation7 + $0x128] ss:$16 sps:$4 sm:$0xff]  }
  0x5c   :  { %v1653_v50 = vld [vmem:[#allocation7 + $0x14c] ss:$16 sps:$4 sm:$0xff]   ;;  %v1648_v51 = vld [vmem:[#allocation7 + $0x140] ss:$16 sps:$4 sm:$0xff]   ;;  %v1656_v52 = vld [vmem:[#allocation7 + $0x164] ss:$16 sps:$4 sm:$0xff]  }
  0x5d   :  { %v1651_v53 = vld [vmem:[#allocation7 + $0x148] ss:$16 sps:$4 sm:$0xff]   ;;  %v1659_v54 = vld [vmem:[#allocation7 + $0x16c] ss:$16 sps:$4 sm:$0xff]   ;;  %v1654_v55 = vld [vmem:[#allocation7 + $0x160] ss:$16 sps:$4 sm:$0xff]  }
  0x5e   :  { %833 = vmatpush1.bf16.msra.mxu0 %v1600_v19  ;;  %915 = vmatpush1.bf16.msra.mxu1 %v1603_v21  ;;  %v1662_v56 = vld [vmem:[#allocation7 + $0x184] ss:$16 sps:$4 sm:$0xff]   ;;  %v1657_v57 = vld [vmem:[#allocation7 + $0x168] ss:$16 sps:$4 sm:$0xff]   ;;  %v1665_v58 = vld [vmem:[#allocation7 + $0x18c] ss:$16 sps:$4 sm:$0xff]  }
  0x5f   :  { %834 = vmatprep.subr.bf16.mxu0 %v1608_v20  ;;  %916 = vmatprep.subr.bf16.mxu1 %v1611_v22  ;;  %v1660_v59 = vld [vmem:[#allocation7 + $0x180] ss:$16 sps:$4 sm:$0xff]   ;;  %v1668_v60 = vld [vmem:[#allocation7 + $0x1a4] ss:$16 sps:$4 sm:$0xff]   ;;  %v1663_v61 = vld [vmem:[#allocation7 + $0x188] ss:$16 sps:$4 sm:$0xff]  }
  0x60   :  { %v1671_v62 = vld [vmem:[#allocation7 + $0x1ac] ss:$16 sps:$4 sm:$0xff]   ;;  %v1666_v63 = vld [vmem:[#allocation7 + $0x1a0] ss:$16 sps:$4 sm:$0xff]   ;;  %v1669_v1 = vld [vmem:[#allocation7 + $0x1a8] ss:$16 sps:$4 sm:$0xff]  }
  0x61   :  { %v1674_v2 = vld [vmem:[#allocation7 + $0x1c4] ss:$16 sps:$4 sm:$0xff]   ;;  %v1677_v3 = vld [vmem:[#allocation7 + $0x1cc] ss:$16 sps:$4 sm:$0xff]   ;;  %v1672_v4 = vld [vmem:[#allocation7 + $0x1c0] ss:$16 sps:$4 sm:$0xff]  }
  0x62   :  { %835 = vmatpush1.bf16.msra.mxu0 %v1606_v23  ;;  %917 = vmatpush1.bf16.msra.mxu1 %v1609_v25  ;;  %v1675_v5 = vld [vmem:[#allocation7 + $0x1c8] ss:$16 sps:$4 sm:$0xff]   ;;  %v1680_v6 = vld [vmem:[#allocation7 + $0x1e4] ss:$16 sps:$4 sm:$0xff]   ;;  %v1683_v7 = vld [vmem:[#allocation7 + $0x1ec] ss:$16 sps:$4 sm:$0xff]  }
  0x63   :  { %836 = vmatprep.subr.bf16.mxu0 %v1614_v24  ;;  %918 = vmatprep.subr.bf16.mxu1 %v1617_v26  ;;  %v1678_v8 = vld [vmem:[#allocation7 + $0x1e0] ss:$16 sps:$4 sm:$0xff]   ;;  %v1681_v9 = vld [vmem:[#allocation7 + $0x1e8] ss:$16 sps:$4 sm:$0xff]   ;;  %v1686_v10 = vld [vmem:[#allocation7 + $0x204] ss:$16 sps:$4 sm:$0xff]  }
  0x64   :  { %v1689_v11 = vld [vmem:[#allocation7 + $0x20c] ss:$16 sps:$4 sm:$0xff]   ;;  %v1987_v13 = vshrl.u32 %v92_v12, 7  ;;  %v1740_v12 = vld [vmem:[#allocation8 + $0x50] sm:$0xff]   ;;  %s1897_s8 = smov [#allocation10]  }
  0x65   :  { %v90_v15 = vld [vmem:[%s2030_s2] sm:$0x7]  ;;  %s1351_s9 = sshll.u32 %s1897_s8, 4  ;;  %s1352_s9 = int_to_ptr.vmem [resolvable:$true] %s1351_s9 }
  0x66   :  { %837 = vmatpush1.bf16.msra.mxu0 %v1612_v27  ;;  %919 = vmatpush1.bf16.msra.mxu1 %v1615_v29  ;;  %v94_v14 = vsub.s32 0, %v1987_v13  ;;  %v98_v16 = vsub.s32 1, %v1987_v13  ;;  %s1854_s10 = scalar_lea.vmem %s1352_s9, 128  ;;  %p1859_p5 = scmp.lt.s32.totalorder %s1352_s9, %s1352_s9 }
  0x67   :  { %838 = vmatprep.subr.bf16.mxu0 %v1620_v28  ;;  %920 = vmatprep.subr.bf16.mxu1 %v1623_v30  ;;  %p1855_p4 = scmp.ne.s32.totalorder %s1352_s9, %s1854_s10  ;;  %p1860_p6 = scmp.lt.s32.totalorder %s1854_s10, %s1854_s10 }
  0x68   :  { %v95_v17 = vrot.slane %v90_v15, %v94_v14  ;;  %v99_v18 = vrot.slane %v90_v15, %v98_v16 }
  0x69   :  { %p1861_p7 = por %p1860_p6, %p1859_p5 }
  0x6a   :  { %839 = vmatpush1.bf16.msra.mxu0 %v1618_v31  ;;  %921 = vmatpush1.bf16.msra.mxu1 %v1621_v33  ;;  %v1687_v33 = vld [vmem:[#allocation7 + $0x208] ss:$16 sps:$4 sm:$0xff]  }
  0x6b   :  { %840 = vmatprep.subr.bf16.mxu0 %v1626_v32  ;;  %922 = vmatprep.subr.bf16.mxu1 %v1629_v34  ;;  %v1684_v32 = vld [vmem:[#allocation7 + $0x200] ss:$16 sps:$4 sm:$0xff]   ;;  %p1862_p8 = pnand %p1861_p7, %p1855_p4 }
  0x6e   :  { %841 = vmatpush1.bf16.msra.mxu0 %v1624_v35  ;;  %923 = vmatpush1.bf16.msra.mxu1 %v1627_v37  ;;  %v1692_v35 = vld [vmem:[#allocation7 + $0x224] ss:$16 sps:$4 sm:$0xff]   ;;  %v1690_v37 = vld [vmem:[#allocation7 + $0x220] ss:$16 sps:$4 sm:$0xff]  }
  0x6f   :  { %842 = vmatprep.subr.bf16.mxu0 %v1632_v36  ;;  %924 = vmatprep.subr.bf16.mxu1 %v1635_v38  ;;  %v1695_v36 = vld [vmem:[#allocation7 + $0x22c] ss:$16 sps:$4 sm:$0xff]   ;;  %v1693_v38 = vld [vmem:[#allocation7 + $0x228] ss:$16 sps:$4 sm:$0xff]  }
  0x72   :  { %843 = vmatpush1.bf16.msra.mxu0 %v1630_v39  ;;  %925 = vmatpush1.bf16.msra.mxu1 %v1633_v41  ;;  %v1698_v39 = vld [vmem:[#allocation7 + $0x244] ss:$16 sps:$4 sm:$0xff]   ;;  %v1696_v41 = vld [vmem:[#allocation7 + $0x240] ss:$16 sps:$4 sm:$0xff]  }
  0x73   :  { %844 = vmatprep.subr.bf16.mxu0 %v1638_v40  ;;  %926 = vmatprep.subr.bf16.mxu1 %v1641_v42  ;;  %v1701_v40 = vld [vmem:[#allocation7 + $0x24c] ss:$16 sps:$4 sm:$0xff]   ;;  %v1699_v42 = vld [vmem:[#allocation7 + $0x248] ss:$16 sps:$4 sm:$0xff]  }
  0x76   :  { %845 = vmatpush1.bf16.msra.mxu0 %v1636_v43  ;;  %927 = vmatpush1.bf16.msra.mxu1 %v1639_v44  ;;  %v1704_v43 = vld [vmem:[#allocation7 + $0x264] ss:$16 sps:$4 sm:$0xff]   ;;  %v1707_v44 = vld [vmem:[#allocation7 + $0x26c] ss:$16 sps:$4 sm:$0xff]  }
  0x77   :  { %846 = vmatprep.subr.bf16.mxu0 %v1644_v45  ;;  %928 = vmatprep.subr.bf16.mxu1 %v1647_v47  ;;  %v1702_v45 = vld [vmem:[#allocation7 + $0x260] ss:$16 sps:$4 sm:$0xff]   ;;  %v1710_v47 = vld [vmem:[#allocation7 + $0x284] ss:$16 sps:$4 sm:$0xff]  }
  0x7a   :  { %847 = vmatpush1.bf16.msra.mxu0 %v1642_v46  ;;  %929 = vmatpush1.bf16.msra.mxu1 %v1645_v49  ;;  %v1705_v46 = vld [vmem:[#allocation7 + $0x268] ss:$16 sps:$4 sm:$0xff]   ;;  %v102_v49 = vsub.s32 2, %v1987_v13 }
  0x7b   :  { %848 = vmatprep.subr.bf16.mxu0 %v1650_v48  ;;  %930 = vmatprep.subr.bf16.mxu1 %v1653_v50  ;;  %v1713_v48 = vld [vmem:[#allocation7 + $0x28c] ss:$16 sps:$4 sm:$0xff]   ;;  %v1711_v50 = vld [vmem:[#allocation7 + $0x288] ss:$16 sps:$4 sm:$0xff]  }
  0x7e   :  { %849 = vmatpush1.bf16.msra.mxu0 %v1648_v51  ;;  %931 = vmatpush1.bf16.msra.mxu1 %v1651_v53  ;;  %v1716_v51 = vld [vmem:[#allocation7 + $0x2a4] ss:$16 sps:$4 sm:$0xff]   ;;  %v103_v53 = vrot.slane %v90_v15, %v102_v49 }
  0x7f   :  { %850 = vmatprep.subr.bf16.mxu0 %v1656_v52  ;;  %932 = vmatprep.subr.bf16.mxu1 %v1659_v54  ;;  %v1719_v52 = vld [vmem:[#allocation7 + $0x2ac] ss:$16 sps:$4 sm:$0xff]   ;;  %v1714_v54 = vld [vmem:[#allocation7 + $0x2a0] ss:$16 sps:$4 sm:$0xff]  }
  0x80   :  { %v1741_v15 = vld [vmem:[#allocation8 + $0xd0] sm:$0xff]  }
  0x82   :  { %851 = vmatpush1.bf16.msra.mxu0 %v1654_v55  ;;  %933 = vmatpush1.bf16.msra.mxu1 %v1657_v57  ;;  %v1717_v55 = vld [vmem:[#allocation7 + $0x2a8] ss:$16 sps:$4 sm:$0xff]   ;;  %v1725_v57 = vld [vmem:[#allocation7 + $0x2cc] ss:$16 sps:$4 sm:$0xff]  }
  0x83   :  { %852 = vmatprep.subr.bf16.mxu0 %v1662_v56  ;;  %934 = vmatprep.subr.bf16.mxu1 %v1665_v58  ;;  %v1722_v56 = vld [vmem:[#allocation7 + $0x2c4] ss:$16 sps:$4 sm:$0xff]  }
  0x86   :  { %853 = vmatpush1.bf16.msra.mxu0 %v1660_v59  ;;  %935 = vmatpush1.bf16.msra.mxu1 %v1663_v61  ;;  %v1720_v59 = vld [vmem:[#allocation7 + $0x2c0] ss:$16 sps:$4 sm:$0xff]   ;;  %v1728_v61 = vld [vmem:[#allocation7 + $0x2e4] ss:$16 sps:$4 sm:$0xff]  }
  0x87   :  { %854 = vmatprep.subr.bf16.mxu0 %v1668_v60  ;;  %936 = vmatprep.subr.bf16.mxu1 %v1671_v62  ;;  %v1723_v60 = vld [vmem:[#allocation7 + $0x2c8] ss:$16 sps:$4 sm:$0xff]   ;;  %v1731_v62 = vld [vmem:[#allocation7 + $0x2ec] ss:$16 sps:$4 sm:$0xff]  }
  0x8a   :  { %855 = vmatpush1.bf16.msra.mxu0 %v1666_v63  ;;  %937 = vmatpush1.bf16.msra.mxu1 %v1669_v1  ;;  %v1726_v1 = vld [vmem:[#allocation7 + $0x2e0] ss:$16 sps:$4 sm:$0xff]  }
  0x8b   :  { %856 = vmatprep.subr.bf16.mxu0 %v1674_v2  ;;  %938 = vmatprep.subr.bf16.mxu1 %v1677_v3  ;;  %v1729_v2 = vld [vmem:[#allocation7 + $0x2e8] ss:$16 sps:$4 sm:$0xff]   ;;  %v1732_v3 = vld [vmem:[#allocation8 + $0x40] sm:$0xff]  }
  0x8e   :  { %857 = vmatpush1.bf16.msra.mxu0 %v1672_v4  ;;  %939 = vmatpush1.bf16.msra.mxu1 %v1675_v5  ;;  %v1733_v4 = vld [vmem:[#allocation8 + $0xc0] sm:$0xff]  }
  0x8f   :  { %858 = vmatprep.subr.bf16.mxu0 %v1680_v6  ;;  %940 = vmatprep.subr.bf16.mxu1 %v1683_v7  ;;  %v1734_v6 = vld [vmem:[#allocation8] sm:$0xff]  }
  0x90   :  { %v1735_v7 = vld [vmem:[#allocation8 + $0x80] sm:$0xff]  }
  0x92   :  { %859 = vmatpush1.bf16.msra.mxu0 %v1678_v8  ;;  %941 = vmatpush1.bf16.msra.mxu1 %v1681_v9  ;;  %v1736_v8 = vld [vmem:[#allocation8 + $0x48] sm:$0xff]  }
  0x93   :  { %869 = vmatprep.subr.bf16.mxu0 %v1686_v10  ;;  %951 = vmatprep.subr.bf16.mxu1 %v1689_v11  ;;  %v1737_v9 = vld [vmem:[#allocation8 + $0xc8] sm:$0xff]  }
  0x94   :  { %v1738_v10 = vld [vmem:[#allocation8 + $0x8] sm:$0xff]  }
  0x95   :  { %v1739_v11 = vld [vmem:[#allocation8 + $0x88] sm:$0xff]  }
 0x128   :  { %v177_v19 = vpop.f32.mrb[0].mxu0  ;;  %v218_v24 = vpop.f32.mrb[0].mxu1 }
 0x129   :  { %v178_v20 = vadd.f32 %v177_v19, %v95_v17  ;;  %v179_v21 = vpop.f32.mrb[1].mxu0  ;;  %v1552_v27 = vpop.f32.mrb[1].mxu1  ;;  %v219_v58 = vadd.f32 %v218_v24, %v103_v53  ;;  %v1742_v17 = vld [vmem:[#allocation8 + $0x10] sm:$0xff]   ;;  %v1744_v19 = vld [vmem:[#allocation8 + $0x58] sm:$0xff]   ;;  %v1749_v24 = vld [vmem:[#allocation8 + $0xe0] sm:$0xff]  }
 0x12a   :  { %v180_v22 = vadd.f32 %v179_v21, %v99_v18  ;;  %v181_v23 = vpop.f32.mrb[2].mxu0  ;;  %v221_v29 = vpop.f32.mrb[2].mxu1  ;;  %v1743_v18 = vld [vmem:[#allocation8 + $0x90] sm:$0xff]   ;;  %v1746_v21 = vld [vmem:[#allocation8 + $0x18] sm:$0xff]   ;;  %v1752_v27 = vld [vmem:[#allocation8 + $0x68] sm:$0xff]  }
 0x12b   :  { %v224_v25 = vmax.f32 %v178_v20, 0.0  ;;  %v182_v26 = vpop.f32.mrb[3].mxu0  ;;  %v1553_v30 = vpop.f32.mrb[3].mxu1  ;;  %v226_v63 = vmax.f32 %v219_v58, 0.0  ;;  %v1745_v20 = vld [vmem:[#allocation8 + $0xd8] sm:$0xff]   ;;  %v1748_v23 = vld [vmem:[#allocation8 + $0x60] sm:$0xff]  }
 0x12c   :  { %v225_v28 = vmax.f32 %v180_v22, 0.0  ;;  %v1747_v22 = vld [vmem:[#allocation8 + $0x98] sm:$0xff]   ;;  %v1751_v26 = vld [vmem:[#allocation8 + $0xa0] sm:$0xff]   ;;  %v1754_v29 = vld [vmem:[#allocation8 + $0x28] sm:$0xff]  }
 0x12d   :  { %v227_v34 = vpack.c.bf16 %v224_v25, %v224_v25  ;;  %v229_v5 = vpack.c.bf16 %v226_v63, %v226_v63  ;;  %v1750_v25 = vld [vmem:[#allocation8 + $0x20] sm:$0xff]   ;;  %v1755_v30 = vld [vmem:[#allocation8 + $0xa8] sm:$0xff]  }
 0x12e   :  { %v228_v31 = vpack.c.bf16 %v225_v28, %v225_v28  ;;  %v1753_v28 = vld [vmem:[#allocation8 + $0xe8] sm:$0xff]  }
 0x12f   :  { %v1466_v63 = vld [vmem:[%s2034_s6] ss:$0 sm:$0xff] }
 0x130   :  { %860 = vmatprep.mubr.bf16.mxu0 %v228_v31  ;;  %942 = vmatprep.mubr.bf16.mxu1 %v228_v31  ;;  %v1756_v31 = vld [vmem:[#allocation8 + $0x70] sm:$0xff]  }
 0x131   :  { %861 = vmatmul.mubr.bf16.vlgmr.msra.gmra.mrb[4].mxu0 %v227_v34  ;;  %943 = vmatmul.mubr.bf16.vlgmr.msra.gmra.mrb[4].mxu1 %v227_v34  ;;  %v1759_v34 = vld [vmem:[#allocation8 + $0xb0] sm:$0xff]  }
 0x132   :  { %870 = vmatpush1.bf16.msra.mxu0 %v1684_v32  ;;  %952 = vmatpush1.bf16.msra.mxu1 %v1687_v33  ;;  %v1757_v32 = vld [vmem:[#allocation8 + $0xf0] sm:$0xff]  }
 0x133   :  { %871 = vmatprep.subr.bf16.mxu0 %v1692_v35  ;;  %953 = vmatprep.subr.bf16.mxu1 %v1695_v36  ;;  %v1758_v33 = vld [vmem:[#allocation8 + $0x30] sm:$0xff]   ;;  %v1760_v35 = vld [vmem:[#allocation8 + $0x78] sm:$0xff]  }
 0x134   :  { %901 = vmatprep.mubr.bf16.mxu0 %v1894_v0  ;;  %983 = vmatprep.mubr.bf16.mxu1 %v1894_v0  ;;  %v1708_v0 = vld [vmem:[#allocation7 + $0x280] ss:$16 sps:$4 sm:$0xff]   ;;  %v1761_v36 = vld [vmem:[#allocation8 + $0xf8] sm:$0xff]  }
 0x136   :  { %872 = vmatpush1.bf16.msra.mxu0 %v1690_v37  ;;  %954 = vmatpush1.bf16.msra.mxu1 %v1693_v38  ;;  %v1762_v37 = vld [vmem:[#allocation8 + $0x38] sm:$0xff]  }
 0x137   :  { %873 = vmatprep.subr.bf16.mxu0 %v1698_v39  ;;  %955 = vmatprep.subr.bf16.mxu1 %v1701_v40  ;;  %v1763_v38 = vld [vmem:[#allocation8 + $0xb8] sm:$0xff]   ;;  %v326_v39 = vld [vmem:[%s2032_s4] sm:$0xf]  ;;  %v342_v40 = vsub.s32 3, %v1987_v13 }
 0x13a   :  { %874 = vmatpush1.bf16.msra.mxu0 %v1696_v41  ;;  %956 = vmatpush1.bf16.msra.mxu1 %v1699_v42  ;;  %v331_v41 = vrot.slane %v326_v39, %v94_v14  ;;  %v339_v42 = vrot.slane %v326_v39, %v102_v49 }
 0x13b   :  { %875 = vmatprep.subr.bf16.mxu0 %v1704_v43  ;;  %957 = vmatprep.subr.bf16.mxu1 %v1707_v44  ;;  %v335_v43 = vrot.slane %v326_v39, %v98_v16  ;;  %v343_v44 = vrot.slane %v326_v39, %v342_v40 }
 0x13e   :  { %876 = vmatpush1.bf16.msra.mxu0 %v1702_v45  ;;  %958 = vmatpush1.bf16.msra.mxu1 %v1705_v46 }
 0x13f   :  { %877 = vmatprep.subr.bf16.mxu0 %v1710_v47  ;;  %959 = vmatprep.subr.bf16.mxu1 %v1713_v48 }
 0x142   :  { %878 = vmatpush1.bf16.msra.mxu0 %v1708_v0  ;;  %960 = vmatpush1.bf16.msra.mxu1 %v1711_v50 }
 0x143   :  { %879 = vmatprep.subr.bf16.mxu0 %v1716_v51  ;;  %961 = vmatprep.subr.bf16.mxu1 %v1719_v52 }
 0x146   :  { %880 = vmatpush1.bf16.msra.mxu0 %v1714_v54  ;;  %962 = vmatpush1.bf16.msra.mxu1 %v1717_v55 }
 0x147   :  { %881 = vmatprep.subr.bf16.mxu0 %v1722_v56  ;;  %963 = vmatprep.subr.bf16.mxu1 %v1725_v57 }
 0x14a   :  { %882 = vmatpush1.bf16.msra.mxu0 %v1720_v59  ;;  %964 = vmatpush1.bf16.msra.mxu1 %v1723_v60 }
 0x14b   :  { %883 = vmatprep.subr.bf16.mxu0 %v1728_v61  ;;  %965 = vmatprep.subr.bf16.mxu1 %v1731_v62 }
 0x14e   :  { %884 = vmatpush1.bf16.msra.mxu0 %v1726_v1  ;;  %966 = vmatpush1.bf16.msra.mxu1 %v1729_v2 }
 0x14f   :  { %1502 = vmatprep.subr.bf16.mxu0 %v1732_v3  ;;  %1524 = vmatprep.subr.bf16.mxu1 %v1733_v4 }
 0x151   :  { %902 = vmatmul.mubr.bf16.vlgmr.msra.gmra.mrb[4].mxu0 %v229_v5  ;;  %984 = vmatmul.mubr.bf16.vlgmr.msra.gmra.mrb[4].mxu1 %v229_v5 }
 0x152   :  { %1503 = vmatpush3.bf16.msra.mxu0 %v1734_v6  ;;  %1525 = vmatpush3.bf16.msra.mxu1 %v1735_v7 }
 0x153   :  { %1504 = vmatprep.subr.bf16.mxu0 %v1736_v8  ;;  %1526 = vmatprep.subr.bf16.mxu1 %v1737_v9 }
 0x156   :  { %1505 = vmatpush3.bf16.msra.mxu0 %v1738_v10  ;;  %1527 = vmatpush3.bf16.msra.mxu1 %v1739_v11 }
 0x157   :  { %1506 = vmatprep.subr.bf16.mxu0 %v1740_v12  ;;  %1528 = vmatprep.subr.bf16.mxu1 %v1741_v15 }
 0x15a   :  { %1507 = vmatpush3.bf16.msra.mxu0 %v1742_v17  ;;  %1529 = vmatpush3.bf16.msra.mxu1 %v1743_v18 }
 0x15b   :  { %1508 = vmatprep.subr.bf16.mxu0 %v1744_v19  ;;  %1530 = vmatprep.subr.bf16.mxu1 %v1745_v20 }
 0x15e   :  { %1509 = vmatpush3.bf16.msra.mxu0 %v1746_v21  ;;  %1531 = vmatpush3.bf16.msra.mxu1 %v1747_v22 }
 0x15f   :  { %1510 = vmatprep.subr.bf16.mxu0 %v1748_v23  ;;  %1532 = vmatprep.subr.bf16.mxu1 %v1749_v24 }
 0x162   :  { %1511 = vmatpush3.bf16.msra.mxu0 %v1750_v25  ;;  %1533 = vmatpush3.bf16.msra.mxu1 %v1751_v26 }
 0x163   :  { %1512 = vmatprep.subr.bf16.mxu0 %v1752_v27  ;;  %1534 = vmatprep.subr.bf16.mxu1 %v1753_v28 }
 0x166   :  { %1513 = vmatpush3.bf16.msra.mxu0 %v1754_v29  ;;  %1535 = vmatpush3.bf16.msra.mxu1 %v1755_v30 }
 0x167   :  { %1514 = vmatprep.subr.bf16.mxu0 %v1756_v31  ;;  %1536 = vmatprep.subr.bf16.mxu1 %v1757_v32 }
 0x16a   :  { %1515 = vmatpush3.bf16.msra.mxu0 %v1758_v33  ;;  %1537 = vmatpush3.bf16.msra.mxu1 %v1759_v34 }
 0x16b   :  { %1516 = vmatprep.subr.bf16.mxu0 %v1760_v35  ;;  %1538 = vmatprep.subr.bf16.mxu1 %v1761_v36 }
 0x16e   :  { %1517 = vmatpush3.bf16.msra.mxu0 %v1762_v37  ;;  %1539 = vmatpush3.bf16.msra.mxu1 %v1763_v38 }
 0x224   :  { %v903_v45 = vpop.f32.mrb[4].mxu0  ;;  %v985_v46 = vpop.f32.mrb[4].mxu1 }
 0x225   :  { %v1554_v47 = vadd.f32 %v903_v45, %v331_v41  ;;  %v1556_v48 = vadd.f32 %v985_v46, %v339_v42  ;;  %v905_v0 = vpop.f32.mrb[5].mxu0  ;;  %v987_v50 = vpop.f32.mrb[5].mxu1 }
 0x226   :  { %v1555_v51 = vadd.f32 %v905_v0, %v335_v43  ;;  %v1557_v52 = vadd.f32 %v987_v50, %v343_v44  ;;  %v907_v53 = vpop.f32.mrb[6].mxu0  ;;  %v989_v54 = vpop.f32.mrb[6].mxu1 }
 0x227   :  { %v992_v55 = vmax.f32 %v1554_v47, 0.0  ;;  %v994_v56 = vmax.f32 %v1556_v48, 0.0  ;;  %v908_v14 = vpop.f32.mrb[7].mxu0  ;;  %v990_v57 = vpop.f32.mrb[7].mxu1 }
 0x228   :  { %v993_v58 = vmax.f32 %v1555_v51, 0.0  ;;  %v995_v49 = vmax.f32 %v1557_v52, 0.0 }
 0x229   :  { %v996_v16 = vpack.c.bf16 %v992_v55, %v992_v55  ;;  %v998_v60 = vpack.c.bf16 %v994_v56, %v994_v56 }
 0x22a   :  { %v997_v59 = vpack.c.bf16 %v993_v58, %v993_v58  ;;  %v999_v13 = vpack.c.bf16 %v995_v49, %v995_v49 }
 0x22c   :  { %1295 = vmatprep.mubr.bf16.mxu0 %v997_v59  ;;  %1335 = vmatprep.mubr.bf16.mxu1 %v999_v13 }
 0x22d   :  { %1296 = vmatmul.mubr.bf16.vlgmr.msra.gmra.mrb[8].mxu0 %v996_v16  ;;  %1336 = vmatmul.mubr.bf16.vlgmr.msra.gmra.mrb[8].mxu1 %v998_v60 }
 0x300   :  { %v1518_v61 = vpop.f32.mrb[8].mxu0  ;;  %v1540_v62 = vpop.f32.mrb[8].mxu1 }
 0x301   :  { %v1519_v1 = vpop.f32.mrb[9].mxu0  ;;  %v1541_v2 = vpop.f32.mrb[9].mxu1 }
 0x302   :  { %v1520_v3 = vadd.f32 %v1519_v1, %v1518_v61  ;;  %v1542_v4 = vadd.f32 %v1541_v2, %v1540_v62  ;;  %v1521_v5 = vpop.f32.mrb[10].mxu0  ;;  %v1543_v6 = vpop.f32.mrb[10].mxu1 }
 0x303   :  { %v1522_v7 = vpop.f32.mrb[11].mxu0  ;;  %v1544_v8 = vpop.f32.mrb[11].mxu1 }
 0x304   :  { %v1298_v9 = vadd.f32 %v1520_v3, %v1466_v63 }
 0x306   :  { %v1338_v10 = vadd.f32 %v1542_v4, %v1298_v9 }
 0x308   :  { %1764 = vtanh.f32 %v1338_v10 }
 0x312   :  { %v1765_v11 = vpop.eup %1764 }
 0x313   :  { %1344 = vst [vmem:[#allocation10] sm:$0xff] %v1765_v11 }
 0x314   :  { %1865 = shalt.err (!%p1862_p8)
}
 0x315   :  { %s1866_s12 = scalar_lea.hbm %s2035_s7, 128 }
 0x316   :  { %p1867_p9 = scmp.ne.s32.totalorder %s2035_s7, %s1866_s12  ;;  %p1870_p10 = scmp.lt.u32.totalorder %s1866_s12, %s2035_s7 }
 0x318   :  { %p1872_p11 = pnand %p1870_p10, %p1867_p9 }
 0x31a   :  { %1875 = shalt.err (!%p1872_p11)
}
 0x31b   :  { %1354 = dma.vmem_to_hbm [thread:$0]  %s1352_s9, 128, %s2035_s7, [#allocation4]  }
 0x31c   :  { %1882 = dma.done.wait [#allocation4], 128  }
 0x31d   :  { %1883 = vsyncadd [#allocation4], 4294967168 }
 0x31e   :  { %1358 = vsyncpa [#allocation3], 1 }
 0x31f   :  { %1359 = vsyncpa [#allocation6], 1 }
 0x320   :  { %1360 = vsyncpa [#allocation9], 1 }
 0x321   :  { %1361 = vsyncpa [#allocation4], 1 }

</bundles_post_ra>
